<compile_context>
chip_gen: v7x
topology: tpu7x:2x2x1
jax: 0.10.0
libtpu: 0.0.40
codegen_flags: <defaults>
</compile_context>

<pallas_src>
import functools
import numpy as np
import jax
import jax.numpy as jnp
from jax.experimental import pallas as pl
from jax.experimental.pallas import tpu as pltpu

_LN_EPS = 1e-5  # nn.LayerNorm default eps


def _round_up(x, m):
    return (x + m - 1) // m * m


def _pick_tile_t(T, wo, cap=512):
    """Largest token tile that divides T, is a multiple of 8 and <= cap.
    Prefers whole output rows (multiples of wo) so tiles stay row-aligned."""
    best = None
    if wo > 0:
        rows = 1
        while rows * wo <= min(cap, T):
            tt = rows * wo
            if T % tt == 0 and tt % 8 == 0:
                best = tt
            rows += 1
    if best is None:
        for tt in range(8, min(cap, T) + 1, 8):
            if T % tt == 0:
                best = tt
    return best


def _patch_embed_kernel(p_ref, w_ref, prm_ref, o_ref, *, eps):
    # p_ref:   (tile_t, K)  bf16 im2col patches for one tile of output tokens
    # w_ref:   (K, C)       bf16 flattened conv weights
    # prm_ref: (3, C)       f32 packed [conv_bias, ln_gamma, ln_beta]
    # o_ref:   (tile_t, C)  f32 LayerNorm'd tokens
    prm = prm_ref[...]
    y = jnp.dot(p_ref[...], w_ref[...], preferred_element_type=jnp.float32)
    y = y + prm[0:1, :]                                   # conv bias

    inv_c = 1.0 / y.shape[-1]
    mean = jnp.sum(y, axis=-1, keepdims=True) * inv_c
    centered = y - mean
    var = jnp.sum(centered * centered, axis=-1, keepdims=True) * inv_c
    inv_std = jax.lax.rsqrt(var + eps)                    # EUP slot, ~free here
    o_ref[...] = (centered * inv_std * prm[1:2, :] + prm[2:3, :]).astype(o_ref.dtype)


def overlap_patch_embed(x_nchw, w_hwio, conv_bias, ln_gamma, ln_beta,
                        *, stride=4, eps=_LN_EPS):
    """Conv2d(k, stride, pad=k//2) + flatten(2).transpose(1,2) + LayerNorm.

    Returns (tokens (N, H_out*W_out, embed_dim), H_out, W_out), matching the
    PyTorch OverlapPatchEmbed.forward interface (NCHW input)."""
    kh, kw, cin, cout = w_hwio.shape
    pad_h, pad_w = kh // 2, kw // 2

    # NCHW -> NHWC, feed the kernel bf16 activations (accumulation stays f32).
    x = jnp.transpose(x_nchw, (0, 2, 3, 1)).astype(jnp.bfloat16)
    N, H, W, _ = x.shape
    ho = (H + 2 * pad_h - kh) // stride + 1
    wo = (W + 2 * pad_w - kw) // stride + 1
    T = ho * wo
    K = kh * kw * cin

    # --- glue: im2col (pure pad/slice/concat; XLA may fuse it into the kernel
    # input DMA thanks to allow_input_fusion=[0] below).
    xp = jnp.pad(x, ((0, 0), (pad_h, pad_h), (pad_w, pad_w), (0, 0)))
    cols = [xp[:, dy:dy + stride * ho:stride, dx:dx + stride * wo:stride, :]
            for dy in range(kh) for dx in range(kw)]
    patches = jnp.concatenate(cols, axis=-1).reshape(N, T, K)

    # NOTE (review): do NOT pad K up to an MXU-friendly size in HBM; Mosaic pads
    # it inside VMEM for free and the kernel is DMA-bound, not MXU-bound.
    w2d = w_hwio.reshape(K, cout).astype(jnp.bfloat16)
    prm = jnp.stack([conv_bias, ln_gamma, ln_beta]).astype(jnp.float32)   # (3, C)

    # --- token tiling: divisor of T, multiple of 8, row-aligned when possible.
    tile_t = _pick_tile_t(T, wo)
    if tile_t is None:   # odd shapes only; standard resolutions never hit this
        T_pad = _round_up(T, 8)
        tile_t = _pick_tile_t(T_pad, wo) or 8
        patches = jnp.pad(patches, ((0, 0), (0, T_pad - T), (0, 0)))
    else:
        T_pad = T

    est = (2 * tile_t * K * 2          # bf16 patch tile, double buffered
           + 2 * tile_t * cout * 4     # f32 output tile, double buffered
           + 2 * K * cout * 2          # bf16 weights
           + 4 * tile_t * cout * 4     # f32 LN intermediates headroom
           + 2 * 3 * cout * 4)
    vmem_limit = int(min(max(2 * est, 16 << 20), 32 << 20))

    kernel = functools.partial(_patch_embed_kernel, eps=eps)
    out = pl.pallas_call(
        kernel,
        out_shape=jax.ShapeDtypeStruct((N, T_pad, cout), jnp.float32),
        grid_spec=pltpu.PrefetchScalarGridSpec(
            num_scalar_prefetch=0,
            grid=(N, T_pad // tile_t),
            in_specs=[
                pl.BlockSpec((None, tile_t, K), lambda b, t: (b, t, 0)),
                pl.BlockSpec((K, cout), lambda b, t: (0, 0)),
                pl.BlockSpec((3, cout), lambda b, t: (0, 0)),
            ],
            out_specs=pl.BlockSpec((None, tile_t, cout), lambda b, t: (b, t, 0)),
        ),
        compiler_params=pltpu.CompilerParams(
            dimension_semantics=("parallel", "parallel"),
            vmem_limit_bytes=vmem_limit,
            allow_input_fusion=[0]),
    )(patches, w2d, prm)

    if T_pad != T:
        out = out[:, :T]
    return out, ho, wo


def init_params(key, in_channels=3, embed_dim=96, patch_size=7):
    """Conv weight ~ N(0, sqrt(2/fan_out)) like the PyTorch module; random bias /
    LN params so the correctness check exercises every path."""
    k_w, k_b, k_g, k_bt = jax.random.split(key, 4)
    fan_out = patch_size * patch_size * embed_dim
    std = float(np.sqrt(2.0 / fan_out))
    return {
        "w": std * jax.random.normal(
            k_w, (patch_size, patch_size, in_channels, embed_dim), jnp.float32),
        "b": 0.02 * jax.random.normal(k_b, (embed_dim,), jnp.float32),
        "ln_g": 1.0 + 0.1 * jax.random.normal(k_g, (embed_dim,), jnp.float32),
        "ln_b": 0.1 * jax.random.normal(k_bt, (embed_dim,), jnp.float32),
    }


def reference(params, x_nchw, stride=4, eps=_LN_EPS):
    """Pure-JAX reference (lax.conv + LayerNorm) for the correctness check."""
    x = jnp.transpose(x_nchw, (0, 2, 3, 1)).astype(jnp.float32)
    kh, kw, _, cout = params["w"].shape
    y = jax.lax.conv_general_dilated(
        x, params["w"], window_strides=(stride, stride),
        padding=((kh // 2, kh // 2), (kw // 2, kw // 2)),
        dimension_numbers=("NHWC", "HWIO", "NHWC"),
        precision=jax.lax.Precision.HIGHEST) + params["b"]
    N, ho, wo, _ = y.shape
    tok = y.reshape(N, ho * wo, cout)
    mean = jnp.mean(tok, axis=-1, keepdims=True)
    var = jnp.mean((tok - mean) ** 2, axis=-1, keepdims=True)
    tok = (tok - mean) / jnp.sqrt(var + eps) * params["ln_g"] + params["ln_b"]
    return tok, ho, wo


if __name__ == "__main__":
    key = jax.random.PRNGKey(0)
    k_x, k_p = jax.random.split(key)

    # Small shapes consistent with the module: NCHW input, 3 channels, 16x16,
    # patch_size=7 / stride=4 -> 4x4 = 16 tokens, embed_dim=96.
    x = jax.random.normal(k_x, (2, 3, 16, 16), jnp.float32)
    params = init_params(k_p, in_channels=3, embed_dim=96, patch_size=7)

    out, ho, wo = overlap_patch_embed(
        x, params["w"], params["b"], params["ln_g"], params["ln_b"])
    out = jax.block_until_ready(out)

    ref, rho, rwo = reference(params, x)
    ref = jax.block_until_ready(ref)

    assert out.shape == (2, 16, 96), out.shape
    assert (ho, wo) == (rho, rwo) == (4, 4), (ho, wo, rho, rwo)
    # bf16 patch/weight feed with f32 accumulation -> loosened tolerance.
    np.testing.assert_allclose(np.asarray(out), np.asarray(ref), rtol=2e-2, atol=2e-2)
    print("KERNEL_OK")
</pallas_src>

<mosaic_0001>
module attributes {stable_mosaic.version = 11 : i64} {
  func.func @_patch_embed_kernel(%arg0: i32, %arg1: i32, %arg2: memref<1x16x147xbf16, #tpu.memory_space<vmem>>, %arg3: memref<147x96xbf16, #tpu.memory_space<vmem>>, %arg4: memref<3x96xf32, #tpu.memory_space<vmem>>, %arg5: memref<1x16x96xf32, #tpu.memory_space<vmem>>) attributes {dimension_semantics = [#tpu.dimension_semantics<parallel>, #tpu.dimension_semantics<parallel>], iteration_bounds = array<i64: 2, 1>, scalar_prefetch = 0 : i64, scratch_operands = 0 : i64, tpu.core_type = #tpu.core_type<tc>, window_params = [{transform_indices = @transform_0, window_bounds = array<i64: 1, 16, 147>}, {pipeline_mode = #tpu.pipeline_mode<synchronous>, transform_indices = @transform_1, window_bounds = array<i64: 147, 96>}, {pipeline_mode = #tpu.pipeline_mode<synchronous>, transform_indices = @transform_2, window_bounds = array<i64: 3, 96>}, {transform_indices = @transform_3, window_bounds = array<i64: 1, 16, 96>}]} {
    %c0 = arith.constant 0 : index
    %c0_0 = arith.constant 0 : index
    %0 = vector.load %arg4[%c0, %c0_0] : memref<3x96xf32, #tpu.memory_space<vmem>>, vector<3x96xf32>
    %c0_1 = arith.constant 0 : index
    %c0_2 = arith.constant 0 : index
    %c0_3 = arith.constant 0 : index
    %1 = vector.load %arg2[%c0_1, %c0_2, %c0_3] : memref<1x16x147xbf16, #tpu.memory_space<vmem>>, vector<1x16x147xbf16>
    %2 = vector.shape_cast %1 : vector<1x16x147xbf16> to vector<16x147xbf16>
    %c0_4 = arith.constant 0 : index
    %c0_5 = arith.constant 0 : index
    %3 = vector.load %arg3[%c0_4, %c0_5] : memref<147x96xbf16, #tpu.memory_space<vmem>>, vector<147x96xbf16>
    %cst = arith.constant dense<0.000000e+00> : vector<16x96xf32>
    %4 = tpu.matmul %2, %3, %cst {dimension_numbers = #tpu.dot_dimension_numbers<[1], [0], [0], [1], [0, 0, 1, 1], [], []>} : vector<16x147xbf16>, vector<147x96xbf16>, vector<16x96xf32> -> vector<16x96xf32>
    %5 = vector.extract_strided_slice %0 {offsets = [0, 0], sizes = [1, 96], strides = [1, 1]} : vector<3x96xf32> to vector<1x96xf32>
    %6 = vector.broadcast %5 : vector<1x96xf32> to vector<16x96xf32>
    %7 = arith.addf %4, %6 : vector<16x96xf32>
    %cst_6 = arith.constant dense<0.000000e+00> : vector<16xf32>
    %8 = vector.multi_reduction <add>, %7, %cst_6 [1] : vector<16x96xf32> to vector<16xf32>
    %9 = vector.shape_cast %8 : vector<16xf32> to vector<16x1xf32>
    %cst_7 = arith.constant 0.010416667 : f32
    %10 = vector.broadcast %cst_7 : f32 to vector<16x1xf32>
    %11 = arith.mulf %9, %10 : vector<16x1xf32>
    %12 = vector.broadcast %11 : vector<16x1xf32> to vector<16x96xf32>
    %13 = arith.subf %7, %12 : vector<16x96xf32>
    %14 = arith.mulf %13, %13 : vector<16x96xf32>
    %cst_8 = arith.constant dense<0.000000e+00> : vector<16xf32>
    %15 = vector.multi_reduction <add>, %14, %cst_8 [1] : vector<16x96xf32> to vector<16xf32>
    %16 = vector.shape_cast %15 : vector<16xf32> to vector<16x1xf32>
    %cst_9 = arith.constant 0.010416667 : f32
    %17 = vector.broadcast %cst_9 : f32 to vector<16x1xf32>
    %18 = arith.mulf %16, %17 : vector<16x1xf32>
    %cst_10 = arith.constant 9.99999974E-6 : f32
    %19 = vector.broadcast %cst_10 : f32 to vector<16x1xf32>
    %20 = arith.addf %18, %19 : vector<16x1xf32>
    %21 = math.rsqrt %20 : vector<16x1xf32>
    %22 = vector.broadcast %21 : vector<16x1xf32> to vector<16x96xf32>
    %23 = arith.mulf %13, %22 : vector<16x96xf32>
    %24 = vector.extract_strided_slice %0 {offsets = [1, 0], sizes = [1, 96], strides = [1, 1]} : vector<3x96xf32> to vector<1x96xf32>
    %25 = vector.broadcast %24 : vector<1x96xf32> to vector<16x96xf32>
    %26 = arith.mulf %23, %25 : vector<16x96xf32>
    %27 = vector.extract_strided_slice %0 {offsets = [2, 0], sizes = [1, 96], strides = [1, 1]} : vector<3x96xf32> to vector<1x96xf32>
    %28 = vector.broadcast %27 : vector<1x96xf32> to vector<16x96xf32>
    %29 = arith.addf %26, %28 : vector<16x96xf32>
    %c0_11 = arith.constant 0 : index
    %c0_12 = arith.constant 0 : index
    %c0_13 = arith.constant 0 : index
    %30 = vector.load %arg5[%c0_11, %c0_12, %c0_13] : memref<1x16x96xf32, #tpu.memory_space<vmem>>, vector<1x16x96xf32>
    %31 = vector.shape_cast %30 : vector<1x16x96xf32> to vector<16x96xf32>
    %32 = vector.shape_cast %29 : vector<16x96xf32> to vector<1x16x96xf32>
    tpu.vector_store %arg5[%c0_11, %c0_12, %c0_13], %32 {strides = array<i32>} : memref<1x16x96xf32, #tpu.memory_space<vmem>>, vector<1x16x96xf32>,
    return
  }
  func.func @transform_0(%arg0: i32, %arg1: i32) -> (i32, i32, i32) {
    %c0_i32 = arith.constant 0 : i32
    %c0_i32_0 = arith.constant 0 : i32
    return %arg0, %arg1, %c0_i32 : i32, i32, i32
  }
  func.func @transform_1(%arg0: i32, %arg1: i32) -> (i32, i32) {
    %c0_i32 = arith.constant 0 : i32
    %c0_i32_0 = arith.constant 0 : i32
    %c0_i32_1 = arith.constant 0 : i32
    return %c0_i32, %c0_i32_0 : i32, i32
  }
  func.func @transform_2(%arg0: i32, %arg1: i32) -> (i32, i32) {
    %c0_i32 = arith.constant 0 : i32
    %c0_i32_0 = arith.constant 0 : i32
    %c0_i32_1 = arith.constant 0 : i32
    return %c0_i32, %c0_i32_0 : i32, i32
  }
  func.func @transform_3(%arg0: i32, %arg1: i32) -> (i32, i32, i32) {
    %c0_i32 = arith.constant 0 : i32
    %c0_i32_0 = arith.constant 0 : i32
    return %arg0, %arg1, %c0_i32 : i32, i32, i32
  }
}

</mosaic_0001>

<bundles_post_ra>
// kernel: tpu_custom_call.1
= control target key start
LH: loop header
LB: loop body
LE: loop exit
PB: predicated region body
PF: predicated region fallthrough
CT: control target
= control target key end

     0   :  { %8 = vsyncpa [#allocation3], 0  ;;  %s1067_s0 = inlined_call_operand.hbm [shape: bf16[2,16,147], index: 0, kind: input, shape index: {}]   ;;  %s1068_s1 = inlined_call_operand.hbm [shape: bf16[147,96], index: 1, kind: input, shape index: {}]   ;;  %s1069_s2 = inlined_call_operand.vmem [shape: f32[3,96], index: 2, kind: input, shape index: {}]   ;;  %s1070_s3 = inlined_call_operand.hbm [shape: f32[2,16,96], index: 3, kind: output, shape index: {}]  }
   0x1   :  { %10 = vsyncpa [#allocation3 + $0x1], 0 }
   0x2   :  { %11 = vsyncpa [#allocation6], 0 }
   0x3   :  { %12 = vsyncpa [#allocation4], 0 }
   0x4   :  { %14 = vsyncpa [#allocation4 + $0x1], 0  ;;  %s831_s12 = smov 0   ;;  %s833_s13 = smov 0  }
   0x5   :  { %s835_s14 = smov 0   ;;  %s837_s15 = smov 0  }
   0x6   :  { %s839_s16 = smov 0   ;;  %s841_s17 = smov 0  }
   0x7 LB: > { %s524_s18 = sadd.s32 4294967295, %s798_s17   ;;  %s525_s19 = sadd.s32 4294967294, %s798_s17   ;;  %s798_s17 = sphi %s841_s17, %s20_s17   ;;  %s794_s16 = sphi %s839_s16, %s1094_s16   ;;  %s790_s15 = sphi %s837_s15, %s1093_s15   ;;  %s786_s14 = sphi %s835_s14, %s1092_s14   ;;  %s782_s13 = sphi %s833_s13, %s1091_s13   ;;  %s778_s12 = sphi %s831_s12, %s1090_s12  }
   0x8   : > { %p54_p0 = scmp.ne.s32.totalorder %s782_s13, %s778_s12  ;;  %p865_p1 = scmp.eq.s32.totalorder %s524_s18, 0 }
   0x9   : > { %p869_p2 = scmp.eq.s32.totalorder %s524_s18, 1  ;;  %p128_p3 = scmp.eq.s32.totalorder %s525_s19, 1 }
   0xa   : > { %s1075_s20 = scalar_select %p865_p1, 1, 0 }
   0xb   : > { %s1076_s21 = scalar_select %p869_p2, 1, 0 }
   0xc   : > { %p875_p4 = por %p865_p1, %p54_p0  ;;  %p526_p5 = scmp.ge.s32.totalorder %s798_s17, 1 }
   0xd   : > { %p880_p6 = por %p128_p3, %p54_p0  ;;  %p135_p7 = scmp.lt.s32.totalorder %s798_s17, 3 }
   0xe   : > { %s1077_s22 = scalar_select %p875_p4, 1, 0 }
   0xf   : > { %s1078_s23 = scalar_select %p880_p6, 1, 0 }
  0x10   : > { %p885_p8 = pnand %p526_p5, %p135_p7  ;;  %s800_s25 = smov [#allocation5]  }
  0x11   : > { %s147_s26 = sshll.u32 %s800_s25, 4  ;;  %s32_s28 = sadd.s32 1, %s794_s16  ;;  %s148_s26 = int_to_ptr.vmem [resolvable:$true] %s147_s26 }
  0x12   : > { %s1079_s24 = scalar_select %p885_p8, 1, 0 }
  0x13   : > { %p564_p9 = pneg %p885_p8  ;;  %s654_s4 = scalar_lea.hbm %s1068_s1, 1216 }
  0x14   : > { %p655_p12 = scmp.ne.s32.totalorder %s1068_s1, %s654_s4  ;;  %p661_p5 = scmp.lt.u32.totalorder %s654_s4, %s1068_s1 }
  0x15   : > { %p894_p11 = pnand %p564_p9, %p865_p1 }
  0x17   : > { %p656_p13 = pneg %p894_p11 }
  0x19   : > { %p657_p0 = pnand %p656_p13, %p655_p12 }
  0x1b   : > { %p658_p3 = pneg %p657_p0 }
  0x1d   : > { %p663_p7 = pnand %p661_p5, %p658_p3 }
  0x1f   : > { %666 = shalt.err (!%p663_p7)
}
  0x20   : > { %s667_s9 = scalar_lea.vmem %s148_s26, 1216  ;;  %p675_p1 = scmp.lt.s32.totalorder %s148_s26, %s148_s26 }
  0x21   : > { %p668_p9 = scmp.ne.s32.totalorder %s148_s26, %s667_s9  ;;  %p676_p4 = scmp.lt.s32.totalorder %s667_s9, %s667_s9 }
  0x23   : > { %p670_p10 = pnand %p668_p9, %p656_p13  ;;  %p677_p8 = por %p676_p4, %p675_p1 }
  0x25   : > { %p671_p6 = pneg %p670_p10 }
  0x27   : > { %p678_p2 = pnand %p677_p8, %p671_p6 }
  0x29   : > { %681 = shalt.err (!%p678_p2)
}
  0x2a   : > { %s801_s10 = smov 64   ;;  %s802_s11 = smov 4  }
  0x2b   : > { %567 = dma.hbm_to_vmem [thread:$0]  (!%p894_p11), %s1068_s1, 1216, %s148_s26, [#allocation6], %s801_s10, %s801_s10, %s802_s11  }
  0x2c   : > { %p34_p1 = scmp.ge.s32.totalorder %s32_s28, 2  ;;  %s41_s25 = sadd.s32 1, %s786_s14 }
  0x2d   : > { %p48_p2 = scmp.ne.s32.totalorder %s786_s14, %s782_s13  ;;  %p49_p4 = scmp.eq.s32.totalorder %s798_s17, 0 }
  0x2e   : > { %s1096_s28 = smov (%p34_p1, %s32_s28), 0  ;;  %p1082_p8 = scmp.ne.s32.totalorder %s1076_s21, 0 }
  0x2f   : > { %p921_p6 = por %p49_p4, %p48_p2  ;;  %s36_s27 = ssub.s32 %s794_s16, %s1096_s28 }
  0x30   : > { %p927_p10 = por %p1082_p8, %p48_p2  ;;  %p577_p12 = scmp.lt.s32.totalorder %s798_s17, 2 }
  0x31   : > { %p39_p11 = scmp.eq.s32.totalorder %s36_s27, 0  ;;  %s164_s26 = sand.u32 1, %s786_s14  }
  0x32   : > { %s529_s4 = sshll.u32 %s164_s26, 4  ;;  %s554_s6 = sshll.u32 %s794_s16, 8 }
  0x33   : > { %s936_s5 = scalar_select %p39_p11, %s786_s14, %s41_s25  }
  0x34   : > { %s942_s9 = scalar_lea.hbm %s1067_s0, %s554_s6  ;;  %s168_s21 = scalar_lea.vmem [#allocation2], %s529_s4 }
  0x35   : > { %s178_s10 = sshll.u32 %s168_s21, 4  ;;  %p948_p13 = pnand %p577_p12, %p921_p6  ;;  %s944_s10 = int_to_ptr.vmem [resolvable:$true] %s178_s10 }
  0x36   : > { %s952_s18 = scalar_lea.sflag [#allocation3], %s164_s26  ;;  %s682_s19 = scalar_lea.hbm %s942_s9, 256 }
  0x37   : > { %p683_p0 = scmp.ne.s32.totalorder %s942_s9, %s682_s19  ;;  %p684_p3 = pneg %p948_p13 }
  0x38   : > { %s687_s29 = scalar_lea.hbm %s1067_s0, 512  ;;  %p688_p9 = scmp.lt.u32.totalorder %s942_s9, %s1067_s0 }
  0x39   : > { %p685_p5 = pnand %p684_p3, %p683_p0  ;;  %p689_p1 = scmp.lt.u32.totalorder %s687_s29, %s682_s19 }
  0x3a   : > { %p691_p4 = scmp.lt.u32.totalorder %s682_s19, %s942_s9 }
  0x3b   : > { %p686_p7 = pneg %p685_p5  ;;  %p690_p2 = por %p689_p1, %p688_p9 }
  0x3d   : > { %p692_p6 = por %p691_p4, %p690_p2 }
  0x3f   : > { %p693_p8 = pnand %p692_p6, %p686_p7 }
  0x41   : > { %696 = shalt.err (!%p693_p8)
}
  0x42   : > { %s697_s26 = scalar_lea.vmem %s944_s10, 256  ;;  %s803_s7 = smov [#allocation2]  }
  0x43   : > { %p698_p12 = scmp.ne.s32.totalorder %s944_s10, %s697_s26  ;;  %s702_s8 = sshll.u32 %s803_s7, 4  ;;  %s703_s8 = int_to_ptr.vmem [resolvable:$false] %s702_s8 }
  0x44   : > { %s704_s21 = scalar_lea.vmem %s703_s8, 512  ;;  %p705_p5 = scmp.lt.s32.totalorder %s944_s10, %s703_s8 }
  0x45   : > { %p700_p11 = pnand %p698_p12, %p684_p3  ;;  %p706_p9 = scmp.lt.s32.totalorder %s704_s21, %s697_s26 }
  0x47   : > { %p701_p0 = pneg %p700_p11  ;;  %p707_p1 = por %p706_p9, %p705_p5 }
  0x49   : > { %p708_p2 = pnand %p707_p1, %p701_p0 }
  0x4b   : > { %711 = shalt.err (!%p708_p2)
}
  0x4c   : > { %s804_s19 = smov 128   ;;  %s805_s25 = smov 8  }
  0x4d   : > { %571 = dma.hbm_to_vmem [thread:$0]  (!%p948_p13), %s942_s9, 256, %s944_s10, %s952_s18, %s804_s19, %s804_s19, %s805_s25  }
  0x4e   : > { %p1085_p3 = scmp.ne.s32.totalorder %s1079_s24, 0 }
  0x4f   : > { %s983_s27 = sand.u32 (!%p1085_p3), 1, %s782_s13   ;;  %p1086_p7 = scmp.ne.s32.totalorder (!%p1085_p3), %s1077_s22, 0 }
  0x50   : > { %190 = sbr.rel (%p1085_p3) target bundleno = 678 (0x2a6), region = 32  ;;  %s533_s29 = sshll.u32 (!%p1085_p3), %s983_s27, 4 }
  0x51   : > { %s193_s4 = scalar_lea.sflag (!%p1085_p3), [#allocation3], %s983_s27  ;;  %s989_s6 = scalar_lea.vmem (!%p1085_p3), [#allocation2], %s533_s29 }
  0x57   : > { %765 = dma.done.wait (%p1086_p7), %s193_s4, 256  }
  0x58   : > { %767 = vsyncadd (%p1086_p7), %s193_s4, 4294967040  ;;  %p1087_p13 = scmp.ne.s32.totalorder %s1075_s20, 0 }
  0x5a   : > { %769 = dma.done.wait (%p1087_p13), [#allocation6], 1216  }
  0x5b   : > { %771 = vsyncadd (%p1087_p13), [#allocation6], 4294966080  ;;  %v806_v0 = vmov 0   ;;  %v637_v1 = vld [vmem:[#allocation5] sm:$0xff]   ;;  %v638_v2 = vld [vmem:[#allocation5 + $0x8] sm:$0xff]   ;;  %vm318_vm0 = vcmask 154624   ;;  %v248_v17 = vlaneseq }
  0x5c   : > { %329 = vmatprep.subr.bf16.mxu0 %v806_v0  ;;  %v639_v3 = vld [vmem:[#allocation5 + $0x10] sm:$0xff]   ;;  %v640_v4 = vld [vmem:[#allocation5 + $0x18] sm:$0xff]   ;;  %v641_v6 = vld [vmem:[#allocation5 + $0x20] sm:$0xff]   ;;  %vm322_vm1 = vcmask 1040384   ;;  %vm323_vm2 = vcmask 1041408   ;;  %v807_v10 = vmov 65535  }
  0x5d   : > { %330 = vmatpush1.bf16.msra.mxu0 %v637_v1  ;;  %v649_v5 = vld [vmem:[%s989_s6 + $0x4] ss:$8 sps:$4 sm:$0xff]   ;;  %v324_v11 = vsel %vm322_vm1, 4294967295, %v807_v10  ;;  %v646_v13 = vld [vmem:[#allocation5 + $0x48] ss:$0 sps:$4 sm:$0x33]  }
  0x5e   : > { %331 = vmatprep.subr.bf16.mxu0 %v806_v0  ;;  %548 = vmatprep.mubr.msk.bf16.mxu0 %vm318_vm0, %v649_v5  ;;  %v642_v7 = vld [vmem:[#allocation5 + $0x28] sm:$0xff]   ;;  %v643_v8 = vld [vmem:[#allocation5 + $0x30] sm:$0xff]   ;;  %v644_v9 = vld [vmem:[#allocation5 + $0x38] sm:$0xff]   ;;  %v325_v14 = vsel %vm323_vm2, %v324_v11, 0  ;;  %v249_v18 = vshrl.u32 %v248_v17, 7  ;;  %vm370_vm3 = vcmask 785408  }
  0x5f   : > { %v645_v12 = vld [vmem:[#allocation5 + $0x40] sm:$0xff]   ;;  %v327_v15 = vand.u32 %v646_v13, %v325_v14  ;;  %s555_s24 = sshll.u32 %s790_s15, 8  ;;  %s222_s9 = scalar_lea.vmem [#allocation7], %s533_s29 }
  0x60   : > { %v647_v16 = vld [vmem:[%s989_s6] ss:$8 sps:$4 sm:$0xff]   ;;  %v250_v19 = vsub.s32 0, %v249_v18  ;;  %v399_v46 = vsub.s32 1, %v249_v18  ;;  %v405_v47 = vsub.s32 2, %v249_v18  ;;  %s427_s10 = sshll.u32 %s222_s9, 4  ;;  %s1015_s26 = scalar_lea.hbm %s1070_s3, %s555_s24  ;;  %s1017_s10 = int_to_ptr.vmem [resolvable:$true] %s427_s10 }
  0x61   : > { %332 = vmatpush1.bf16.msra.mxu0 %v638_v2  ;;  %v226_v20 = vld [vmem:[%s1069_s2] sm:$0x7]  ;;  %s412_s15 = scalar_lea.sflag [#allocation4], %s983_s27  ;;  %s712_s7 = scalar_lea.vmem %s1017_s10, 256 }
  0x62   : > { %333 = vmatprep.subr.bf16.mxu0 %v806_v0  ;;  %v251_v21 = vrot.slane %v226_v20, %v250_v19  ;;  %v400_v48 = vrot.slane %v226_v20, %v399_v46  ;;  %v406_v50 = vrot.slane %v226_v20, %v405_v47  ;;  %p713_p4 = scmp.ne.s32.totalorder %s1017_s10, %s712_s7  ;;  %s808_s8 = smov [#allocation7]  }
  0x63   : > { %s716_s21 = sshll.u32 %s808_s8, 4  ;;  %s717_s21 = int_to_ptr.vmem [resolvable:$false] %s716_s21 }
  0x64   : > { %p714_p6 = pnand %p713_p4, %p927_p10  ;;  %s718_s19 = scalar_lea.vmem %s717_s21, 512 }
  0x65   : > { %334 = vmatpush1.bf16.msra.mxu0 %v639_v3  ;;  %p719_p12 = scmp.lt.s32.totalorder %s1017_s10, %s717_s21  ;;  %p720_p11 = scmp.lt.s32.totalorder %s718_s19, %s712_s7 }
  0x66   : > { %335 = vmatprep.subr.bf16.mxu0 %v806_v0  ;;  %p715_p8 = pneg %p714_p6 }
  0x67   : > { %p721_p0 = por %p720_p11, %p719_p12 }
  0x69   : > { %336 = vmatpush1.bf16.msra.mxu0 %v640_v4  ;;  %p722_p5 = pnand %p721_p0, %p715_p8 }
  0x6a   : > { %337 = vmatprep.subr.bf16.mxu0 %v806_v0 }
  0x6d   : > { %338 = vmatpush1.bf16.msra.mxu0 %v641_v6 }
  0x6e   : > { %339 = vmatprep.subr.bf16.mxu0 %v806_v0 }
  0x71   : > { %340 = vmatpush1.bf16.msra.mxu0 %v642_v7 }
  0x72   : > { %341 = vmatprep.subr.bf16.mxu0 %v806_v0 }
  0x75   : > { %342 = vmatpush1.bf16.msra.mxu0 %v643_v8 }
  0x76   : > { %343 = vmatprep.subr.bf16.mxu0 %v806_v0 }
  0x79   : > { %344 = vmatpush1.bf16.msra.mxu0 %v644_v9 }
  0x7a   : > { %345 = vmatprep.subr.bf16.mxu0 %v806_v0 }
  0x7d   : > { %346 = vmatpush1.bf16.msra.mxu0 %v645_v12 }
  0x7e   : > { %347 = vmatprep.subr.bf16.mxu0 %v806_v0 }
  0x81   : > { %348 = vmatpush1.bf16.msra.mxu0 %v327_v15 }
  0x84   : > { %362 = vmatmul.mubr.bf16.vlgmr.msra.gmra.mrb[0].mxu0 %v647_v16 }
 0x157   : > { %v363_v22 = vpop.f32.mrb[0].mxu0 }
 0x158   : > { %v364_v23 = vadd.f32 %v363_v22, %v251_v21  ;;  %v365_v24 = vpop.f32.mrb[1].mxu0 }
 0x159   : > { %v366_v25 = vpop.f32.mrb[2].mxu0 }
 0x15a   : > { %v367_v26 = vadd.f32 %v366_v25, %v251_v21  ;;  %v368_v27 = vpop.f32.mrb[3].mxu0  ;;  %v371_v28 = vsel %vm370_vm3, %v364_v23, 0.0 }
 0x15b   : > { %372 = vadd.xlane.f32.xlu0 %v371_v28 }
 0x15c   : > { %v374_v29 = vsel %vm370_vm3, %v367_v26, 0.0 }
 0x15f   : > { %375 = vadd.xlane.f32.xlu0 %v374_v29 }
 0x1e8   : > { %v373_v30 = vpop.xlane.xlu0 %372 }
 0x1e9   : > { %v377_v31 = vmul.f32 0.010416667, %v373_v30 }
 0x1eb   : > { %v379_v32 = vsub.f32 %v364_v23, %v377_v31 }
 0x1ec   : > { %v376_v33 = vpop.xlane.xlu0 %375 }
 0x1ed   : > { %v378_v34 = vmul.f32 0.010416667, %v376_v33  ;;  %v381_v35 = vmul.f32 %v379_v32, %v379_v32 }
 0x1ef   : > { %v380_v36 = vsub.f32 %v367_v26, %v378_v34  ;;  %v383_v37 = vsel %vm370_vm3, %v381_v35, 0.0 }
 0x1f0   : > { %384 = vadd.xlane.f32.xlu1 %v383_v37 }
 0x1f1   : > { %v382_v38 = vmul.f32 %v380_v36, %v380_v36 }
 0x1f3   : > { %v386_v39 = vsel %vm370_vm3, %v382_v38, 0.0 }
 0x1f4   : > { %387 = vadd.xlane.f32.xlu1 %v386_v39 }
 0x27d   : > { %v385_v40 = vpop.xlane.xlu1 %384 }
 0x27e   : > { %v389_v41 = vmul.f32 0.010416667, %v385_v40 }
 0x280   : > { %v391_v42 = vadd.f32 1e-05, %v389_v41 }
 0x281   : > { %v388_v43 = vpop.xlane.xlu1 %387 }
 0x282   : > { %650 = vrsqrt.f32 %v391_v42  ;;  %v390_v44 = vmul.f32 0.010416667, %v388_v43 }
 0x284   : > { %v392_v45 = vadd.f32 1e-05, %v390_v44 }
 0x286   : > { %652 = vrsqrt.f32 %v392_v45 }
 0x28c   : > { %v651_v49 = vpop.eup %650 }
 0x28d   : > { %v395_v51 = vmul.f32 %v651_v49, %v379_v32 }
 0x28f   : > { %v401_v52 = vmul.f32 %v400_v48, %v395_v51 }
 0x290   : > { %v653_v53 = vpop.eup %652 }
 0x291   : > { %v407_v54 = vadd.f32 %v406_v50, %v401_v52  ;;  %v396_v55 = vmul.f32 %v653_v53, %v380_v36 }
 0x293   : > { %v402_v56 = vmul.f32 %v400_v48, %v396_v55  ;;  %409 = vst.msk [vmem:[%s222_s9] sm:$0xff] %vm370_vm3, %v407_v54 }
 0x295   : > { %v408_v57 = vadd.f32 %v406_v50, %v402_v56 }
 0x297   : > { %410 = vst.msk [vmem:[%s222_s9 + $0x8] sm:$0xff] %vm370_vm3, %v408_v57 }
 0x298   : > { %725 = shalt.err (!%p722_p5)
}
 0x299   : > { %s726_s25 = scalar_lea.hbm %s1015_s26, 256  ;;  %s730_s6 = scalar_lea.hbm %s1070_s3, 512 }
 0x29a   : > { %p727_p9 = scmp.ne.s32.totalorder %s1015_s26, %s726_s25  ;;  %p731_p3 = scmp.lt.u32.totalorder %s1015_s26, %s1070_s3 }
 0x29b   : > { %p732_p7 = scmp.lt.u32.totalorder %s730_s6, %s726_s25  ;;  %p734_p4 = scmp.lt.u32.totalorder %s726_s25, %s1015_s26 }
 0x29c   : > { %p728_p1 = pnand %p727_p9, %p927_p10 }
 0x29d   : > { %p733_p13 = por %p732_p7, %p731_p3 }
 0x29e   : > { %p729_p2 = pneg %p728_p1 }
 0x29f   : > { %p735_p6 = por %p734_p4, %p733_p13 }
 0x2a1   : > { %p736_p8 = pnand %p735_p6, %p729_p2 }
 0x2a3   : > { %739 = shalt.err (!%p736_p8)
}
 0x2a4   : > { %s809_s24 = smov 128   ;;  %s810_s9 = smov 8  }
 0x2a5   : > { %562 = dma.vmem_to_hbm [thread:$0]  (%p927_p10), %s1017_s10, 256, %s1015_s26, %s412_s15, %s809_s24, %s809_s24, %s810_s9  }
 0x2a6 PF: > { %s442_s11 = sand.u32 1, %s778_s12   ;;  %p1088_p12 = scmp.ne.s32.totalorder %s1078_s23, 0 }
 0x2a7   : > { %p1089_p11 = scmp.ge.s32.totalorder %s798_s17, 2  ;;  %s443_s18 = scalar_lea.sflag [#allocation4], %s442_s11 }
 0x2a9   : > { %p573_p0 = pnand %p1089_p11, %p1088_p12 }
 0x2ab   : > { %773 = dma.done.wait (!%p573_p0), %s443_s18, 256  }
 0x2ac   : > { %775 = vsyncadd (!%p573_p0), %s443_s18, 4294967040  ;;  %s20_s17 = sadd.s32 1, %s798_s17   ;;  %s1090_s12 = smov %s782_s13 }
 0x2ad   : > { %p17_p5 = scmp.ge.s32.totalorder %s20_s17, 4   ;;  %s1091_s13 = smov %s786_s14 }
 0x2ae   : > { %s1092_s14 = smov %s936_s5  ;;  %s1093_s15 = smov %s794_s16 }
 0x2af   : > { %s1094_s16 = smov %s1096_s28  ;;  %19 = sbr.rel (!%p17_p5) target bundleno = 7 (0x7), region = 81 }
 0x2b6   :  { %448 = vsyncpa [#allocation3], 1 }
 0x2b7   :  { %450 = vsyncpa [#allocation3 + $0x1], 1 }
 0x2b8   :  { %451 = vsyncpa [#allocation6], 1 }
 0x2b9   :  { %452 = vsyncpa [#allocation4], 1 }
 0x2ba   :  { %454 = vsyncpa [#allocation4 + $0x1], 1 }

</bundles_post_ra>
